<compile_context>
chip_gen: v7x
topology: tpu7x:2x2x1
jax: 0.10.0
libtpu: 0.0.40
codegen_flags: <defaults>
</compile_context>

<pallas_src>
import functools

import jax
import jax.numpy as jnp
from jax.experimental import pallas as pl
from jax.experimental.pallas import tpu as pltpu


# ----------------------------- tiling budgets (bytes) ------------------------
_VMEM_TILE_BUDGET = 40 * 1024 * 1024         # budget used when sizing blocks
_WEIGHT_RESIDENCY_BUDGET = 16 * 1024 * 1024  # double-buffered weight tile cap
_VMEM_LIMIT_CAP = 56 * 1024 * 1024           # stay under v7x 64 MiB VMEM/core
_STATE_VREG_BYTES = 32 * 1024                # ~8 vregs per carried state array
_MAX_TIME_BLOCK = 256                        # compile-time / scratch sanity cap


def _cdiv(a, b):
    return -(-a // b)


def _round_up(x, m):
    return _cdiv(x, m) * m


def _largest_tile_multiple_128(n_p, cap):
    """Largest multiple-of-128 divisor of n_p (n_p is a multiple of 128) <= cap."""
    k = n_p // 128
    best = 128
    for d in range(1, k + 1):
        if k % d == 0 and d * 128 <= cap:
            best = d * 128
    return best


def _make_spiking_kernel(dt, tau_m, tau_s, tt, tb, n_in_p, n_out_tile, chunk,
                         unroll, out_dtype):
    alpha = 1.0 - dt / tau_m   # membrane leak
    beta = 1.0 - dt / tau_s    # synapse leak
    gain = dt / tau_m
    n_chunks = n_out_tile // chunk

    def kernel(x_ref, w_ref, out_ref, v_ref, i_ref, cur_ref):
        t_blk = pl.program_id(2)

        # Reset V/I at the start of each (batch-block, n_out-block) time sweep.
        @pl.when(t_blk == 0)
        def _():
            v_ref[...] = jnp.zeros_like(v_ref)
            i_ref[...] = jnp.zeros_like(i_ref)

        # ONE MXU matmul for all tt steps of this block: the synaptic input
        # current does not depend on the recurrence, only the V/I update does.
        x_all = x_ref[...].reshape(tt * tb, n_in_p)
        cur_ref[...] = jnp.dot(
            x_all, w_ref[...], preferred_element_type=jnp.float32
        ).reshape(tt, tb, n_out_tile)

        # Strictly sequential elementwise V/I recurrence over the tt steps,
        # chunked over n_out so the register carry stays ~8 vregs per array.
        def recurrence(cur_v, out_v, v0, i0):
            def step(t, carry):
                v, i = carry
                v_new = alpha * v + gain * i            # uses previous I
                i_new = beta * i + cur_v[t]
                spikes = v_new > 1.0
                out_v[t] = spikes.astype(out_dtype)
                return jnp.where(spikes, 0.0, v_new), i_new
            return jax.lax.fori_loop(0, tt, step, (v0, i0), unroll=unroll)

        if n_chunks == 1:
            v_fin, i_fin = recurrence(cur_ref, out_ref, v_ref[...], i_ref[...])
            v_ref[...] = v_fin
            i_ref[...] = i_fin
        else:
            for c in range(n_chunks):
                sl = pl.ds(c * chunk, chunk)
                v_fin, i_fin = recurrence(cur_ref.at[:, :, sl],
                                          out_ref.at[:, :, sl],
                                          v_ref[:, sl], i_ref[:, sl])
                v_ref[:, sl] = v_fin
                i_ref[:, sl] = i_fin

    return kernel


@functools.partial(jax.jit, static_argnames=(
    "dt", "tau_m", "tau_s", "compute_dtype", "out_dtype", "max_time_block"))
def spiking_linear_forward(x, weight, *, dt=1.0, tau_m=20.0, tau_s=5.0,
                           compute_dtype=jnp.bfloat16, out_dtype=jnp.bfloat16,
                           max_time_block=None):
    """x: (T, B, N_in) float32 spikes; weight: (N_out, N_in) float32.
    Returns (T, B, N_out) spike trains in out_dtype (spikes are exactly {0,1},
    so bf16 output is lossless)."""
    T, B, n_in = x.shape
    n_out = weight.shape[0]

    x_bytes = jnp.dtype(compute_dtype).itemsize
    w_bytes = x_bytes
    o_bytes = jnp.dtype(out_dtype).itemsize

    # Lane-dense feature padding (exact: padded rows/cols are zero).
    n_in_p = _round_up(n_in, 128)
    n_out_p = _round_up(n_out, 128)

    # --- batch blocking: sublane-dense, >=2 parallel blocks once B >= 16 ----
    b_pad8 = _round_up(B, 8)
    if b_pad8 >= 16:
        tb = min(64, _round_up(b_pad8 // 2, 8))
    else:
        tb = b_pad8
    b_pad = _round_up(b_pad8, tb)            # zero rows: never spike, sliced off
    b_blocks = b_pad // tb

    # --- n_out blocking: bound weight residency; split for megacore if B small
    w_tile_cap = max(128, (_WEIGHT_RESIDENCY_BUDGET // 2) // (n_in_p * w_bytes))
    n_out_tile = _largest_tile_multiple_128(n_out_p, w_tile_cap)
    o_blocks = n_out_p // n_out_tile
    if b_blocks == 1 and o_blocks == 1 and n_out_p >= 512:
        # Give the second TensorCore (v7x) an n_out block to chew on; keep the
        # per-block matmul N >= 256 for the 2x256x256 MXU (v6e/v7x).
        n_out_tile = _largest_tile_multiple_128(n_out_p, n_out_p // 2)
        o_blocks = n_out_p // n_out_tile

    # --- time blocking: size tt from the VMEM byte budget, pad T to fit -----
    fixed = (2 * n_in_p * n_out_tile * w_bytes        # double-buffered weight
             + 2 * tb * n_out_tile * 4)               # V, I scratch
    per_step = tb * (2 * n_in_p * x_bytes             # x block (double-buffered)
                     + 2 * n_out_tile * o_bytes       # out block (double-buffered)
                     + n_out_tile * 4)                # cur scratch
    tt_cap = _MAX_TIME_BLOCK if max_time_block is None else int(max_time_block)
    tt_max = max(1, min(tt_cap, (_VMEM_TILE_BUDGET - fixed) // per_step))
    n_tblocks = _cdiv(T, tt_max)
    tt = _cdiv(T, n_tblocks)
    T_pad = n_tblocks * tt                   # trailing zero-spike steps: exact

    footprint = fixed + tt * per_step
    vmem_limit = int(min(_VMEM_LIMIT_CAP,
                         max(footprint + footprint // 4 + (2 << 20), 32 << 20)))

    # --- recurrence chunking over n_out lanes (bounds vreg pressure) --------
    chunk_cap = max(128, (_STATE_VREG_BYTES // (tb * 4)) // 128 * 128)
    chunk = _largest_tile_multiple_128(n_out_tile, chunk_cap)
    unroll = int(min(tt, 8))

    # --- padded / pre-transposed operands ------------------------------------
    x_p = jnp.pad(x, ((0, T_pad - T), (0, b_pad - B), (0, n_in_p - n_in)))
    x_p = x_p.astype(compute_dtype)          # spikes are {0,1}: lossless cast
    w_t = jnp.pad(weight.T, ((0, n_in_p - n_in), (0, n_out_p - n_out)))
    w_t = w_t.astype(compute_dtype)

    kernel = _make_spiking_kernel(float(dt), float(tau_m), float(tau_s),
                                  tt, tb, n_in_p, n_out_tile, chunk, unroll,
                                  out_dtype)

    out_p = pl.pallas_call(
        kernel,
        out_shape=jax.ShapeDtypeStruct((T_pad, b_pad, n_out_p), out_dtype),
        grid_spec=pltpu.PrefetchScalarGridSpec(
            num_scalar_prefetch=0,
            grid=(b_blocks, o_blocks, n_tblocks),
            in_specs=[
                # tt time steps of spikes per grid iteration.
                pl.BlockSpec((tt, tb, n_in_p), lambda b, o, t: (t, b, 0)),
                # One (N_in, n_out_tile) weight slab, constant across time.
                pl.BlockSpec((n_in_p, n_out_tile), lambda b, o, t: (0, o)),
            ],
            out_specs=pl.BlockSpec((tt, tb, n_out_tile),
                                   lambda b, o, t: (t, b, o)),
            scratch_shapes=[
                pltpu.VMEM((tb, n_out_tile), jnp.float32),       # membrane V
                pltpu.VMEM((tb, n_out_tile), jnp.float32),       # synaptic I
                pltpu.VMEM((tt, tb, n_out_tile), jnp.float32),   # block currents
            ],
        ),
        compiler_params=pltpu.CompilerParams(
            # Batch and n_out blocks are independent (megacore-parallel on
            # v7x); the time axis is a sequential recurrence carried in VMEM.
            dimension_semantics=("parallel", "parallel", "arbitrary"),
            vmem_limit_bytes=vmem_limit,
        ),
    )(x_p, w_t)

    return out_p[:T, :B, :n_out]


class SpikingLinearLayerPallas:
    """JAX/Pallas port of SpikingLinearLayer (forward pass). Weight ~ Normal(mu, mu),
    matching nn.init.normal_(self.weight, mu, mu)."""

    def __init__(self, input_dim, output_dim, T=20, dt=1, tau_m=20.0, tau_s=5.0,
                 mu=0.1, key=None):
        self.input_dim = input_dim
        self.output_dim = output_dim
        self.steps = T // dt
        self.dt = dt
        self.tau_m = tau_m
        self.tau_s = tau_s
        if key is None:
            key = jax.random.PRNGKey(0)
        self.weight = mu + mu * jax.random.normal(
            key, (output_dim, input_dim), dtype=jnp.float32)

    def __call__(self, x):
        # TODO(synk): only the forward pass is implemented; the EventProp custom
        # backward (snnF.SpikingLinearEventProp.backward) is not ported.
        return spiking_linear_forward(
            x, self.weight, dt=float(self.dt), tau_m=float(self.tau_m),
            tau_s=float(self.tau_s))


def _reference_forward(x, weight, dt, tau_m, tau_s, compute_dtype=jnp.bfloat16):
    """Pure-JAX reference with the same numerical recipe (bf16 matmul operands
    with the contraction dim zero-padded like the kernel, f32 accumulation and
    f32 state)."""
    T, B, n_in = x.shape
    n_out = weight.shape[0]
    n_in_p = _round_up(n_in, 128)
    alpha, beta, gain = 1.0 - dt / tau_m, 1.0 - dt / tau_s, dt / tau_m
    xc = jnp.pad(x, ((0, 0), (0, 0), (0, n_in_p - n_in))).astype(compute_dtype)
    w_t = jnp.pad(weight.T, ((0, n_in_p - n_in), (0, 0))).astype(compute_dtype)

    def step(carry, x_t):
        v, i = carry
        v_new = alpha * v + gain * i
        i_new = beta * i + jnp.dot(x_t, w_t, preferred_element_type=jnp.float32)
        s = v_new > 1.0
        return (jnp.where(s, 0.0, v_new), i_new), s.astype(jnp.float32)

    init = (jnp.zeros((B, n_out), jnp.float32), jnp.zeros((B, n_out), jnp.float32))
    _, out = jax.lax.scan(step, init, xc)
    return out


if __name__ == "__main__":
    key = jax.random.PRNGKey(0)
    k1, k2, k3, k4 = jax.random.split(key, 4)

    # Test 1: tiny shapes consistent with the module defaults.
    T, B, N_IN, N_OUT = 8, 2, 32, 16
    layer = SpikingLinearLayerPallas(N_IN, N_OUT, T=T, dt=1,
                                     tau_m=20.0, tau_s=5.0, mu=0.1, key=k1)
    x = (jax.random.uniform(k2, (T, B, N_IN)) < 0.5).astype(jnp.float32)
    out = jax.block_until_ready(layer(x))
    ref = _reference_forward(x, layer.weight, float(layer.dt),
                             layer.tau_m, layer.tau_s)
    assert out.shape == (T, B, N_OUT)
    assert jnp.allclose(out.astype(jnp.float32), ref, atol=1e-6), \
        "mismatch vs JAX reference (test 1)"

    # Test 2: awkward T / B exercising time padding, multiple sequential time
    # blocks (V/I carried across grid steps) and two parallel batch blocks.
    T2, B2, N_IN2, N_OUT2 = 13, 20, 200, 300
    w2 = 0.1 + 0.1 * jax.random.normal(k3, (N_OUT2, N_IN2), dtype=jnp.float32)
    x2 = (jax.random.uniform(k4, (T2, B2, N_IN2)) < 0.3).astype(jnp.float32)
    out2 = jax.block_until_ready(
        spiking_linear_forward(x2, w2, dt=1.0, tau_m=20.0, tau_s=5.0,
                               max_time_block=4))
    ref2 = _reference_forward(x2, w2, 1.0, 20.0, 5.0)
    assert out2.shape == (T2, B2, N_OUT2)
    assert jnp.allclose(out2.astype(jnp.float32), ref2, atol=1e-6), \
        "mismatch vs JAX reference (test 2)"

    print("KERNEL_OK")
</pallas_src>

<mosaic_0001>
module attributes {stable_mosaic.version = 11 : i64} {
  func.func @kernel(%arg0: i32, %arg1: i32, %arg2: i32, %arg3: memref<8x8x128xbf16, #tpu.memory_space<vmem>>, %arg4: memref<128x128xbf16, #tpu.memory_space<vmem>>, %arg5: memref<8x8x128xbf16, #tpu.memory_space<vmem>>, %arg6: memref<8x128xf32, #tpu.memory_space<vmem>>, %arg7: memref<8x128xf32, #tpu.memory_space<vmem>>, %arg8: memref<8x8x128xf32, #tpu.memory_space<vmem>>) attributes {dimension_semantics = [#tpu.dimension_semantics<parallel>, #tpu.dimension_semantics<parallel>, #tpu.dimension_semantics<arbitrary>], iteration_bounds = array<i64: 1, 1, 1>, scalar_prefetch = 0 : i64, scratch_operands = 3 : i64, tpu.core_type = #tpu.core_type<tc>, window_params = [{transform_indices = @transform_0, window_bounds = array<i64: 8, 8, 128>}, {transform_indices = @transform_1, window_bounds = array<i64: 128, 128>}, {transform_indices = @transform_2, window_bounds = array<i64: 8, 8, 128>}]} {
    %c0_i32 = arith.constant 0 : i32
    %0 = arith.cmpi eq, %arg2, %c0_i32 : i32
    %1 = arith.extui %0 : i1 to i32
    %c0_i32_0 = arith.constant 0 : i32
    %2 = arith.cmpi ne, %1, %c0_i32_0 : i32
    scf.if %2 {
      %cst_89 = arith.constant 0.000000e+00 : f32
      %189 = vector.broadcast %cst_89 : f32 to vector<8x128xf32>
      %c0_90 = arith.constant 0 : index
      %c0_91 = arith.constant 0 : index
      %190 = vector.load %arg6[%c0_90, %c0_91] : memref<8x128xf32, #tpu.memory_space<vmem>>, vector<8x128xf32>
      tpu.vector_store %arg6[%c0_90, %c0_91], %189 {strides = array<i32>} : memref<8x128xf32, #tpu.memory_space<vmem>>, vector<8x128xf32>,
      %cst_92 = arith.constant 0.000000e+00 : f32
      %191 = vector.broadcast %cst_92 : f32 to vector<8x128xf32>
      %c0_93 = arith.constant 0 : index
      %c0_94 = arith.constant 0 : index
      %192 = vector.load %arg7[%c0_93, %c0_94] : memref<8x128xf32, #tpu.memory_space<vmem>>, vector<8x128xf32>
      tpu.vector_store %arg7[%c0_93, %c0_94], %191 {strides = array<i32>} : memref<8x128xf32, #tpu.memory_space<vmem>>, vector<8x128xf32>,
    } else {
    }
    %c0 = arith.constant 0 : index
    %c0_1 = arith.constant 0 : index
    %c0_2 = arith.constant 0 : index
    %3 = vector.load %arg3[%c0, %c0_1, %c0_2] : memref<8x8x128xbf16, #tpu.memory_space<vmem>>, vector<8x8x128xbf16>
    %4 = vector.shape_cast %3 : vector<8x8x128xbf16> to vector<64x128xbf16>
    %c0_3 = arith.constant 0 : index
    %c0_4 = arith.constant 0 : index
    %5 = vector.load %arg4[%c0_3, %c0_4] : memref<128x128xbf16, #tpu.memory_space<vmem>>, vector<128x128xbf16>
    %cst = arith.constant dense<0.000000e+00> : vector<64x128xf32>
    %6 = tpu.matmul %4, %5, %cst {dimension_numbers = #tpu.dot_dimension_numbers<[1], [0], [0], [1], [0, 0, 1, 1], [], []>} : vector<64x128xbf16>, vector<128x128xbf16>, vector<64x128xf32> -> vector<64x128xf32>
    %7 = vector.shape_cast %6 : vector<64x128xf32> to vector<8x8x128xf32>
    %c0_5 = arith.constant 0 : index
    %c0_6 = arith.constant 0 : index
    %c0_7 = arith.constant 0 : index
    %8 = vector.load %arg8[%c0_5, %c0_6, %c0_7] : memref<8x8x128xf32, #tpu.memory_space<vmem>>, vector<8x8x128xf32>
    tpu.vector_store %arg8[%c0_5, %c0_6, %c0_7], %7 {strides = array<i32>} : memref<8x8x128xf32, #tpu.memory_space<vmem>>, vector<8x8x128xf32>,
    %c0_8 = arith.constant 0 : index
    %c0_9 = arith.constant 0 : index
    %9 = vector.load %arg6[%c0_8, %c0_9] : memref<8x128xf32, #tpu.memory_space<vmem>>, vector<8x128xf32>
    %c0_10 = arith.constant 0 : index
    %c0_11 = arith.constant 0 : index
    %10 = vector.load %arg7[%c0_10, %c0_11] : memref<8x128xf32, #tpu.memory_space<vmem>>, vector<8x128xf32>
    %c0_i32_12 = arith.constant 0 : i32
    %cst_13 = arith.constant 0.949999988 : f32
    %11 = vector.broadcast %cst_13 : f32 to vector<8x128xf32>
    %12 = arith.mulf %11, %9 : vector<8x128xf32>
    %cst_14 = arith.constant 5.000000e-02 : f32
    %13 = vector.broadcast %cst_14 : f32 to vector<8x128xf32>
    %14 = arith.mulf %13, %10 : vector<8x128xf32>
    %15 = arith.addf %12, %14 : vector<8x128xf32>
    %cst_15 = arith.constant 8.000000e-01 : f32
    %16 = vector.broadcast %cst_15 : f32 to vector<8x128xf32>
    %17 = arith.mulf %16, %10 : vector<8x128xf32>
    %18 = arith.index_cast %c0_i32_12 : i32 to index
    %c0_16 = arith.constant 0 : index
    %c0_17 = arith.constant 0 : index
    %19 = vector.load %arg8[%18, %c0_16, %c0_17] : memref<8x8x128xf32, #tpu.memory_space<vmem>>, vector<1x8x128xf32>
    %20 = vector.shape_cast %19 : vector<1x8x128xf32> to vector<8x128xf32>
    %21 = arith.addf %17, %20 : vector<8x128xf32>
    %cst_18 = arith.constant 1.000000e+00 : f32
    %22 = vector.broadcast %cst_18 : f32 to vector<8x128xf32>
    %23 = arith.cmpf ogt, %15, %22 : vector<8x128xf32>
    %24 = arith.extui %23 : vector<8x128xi1> to vector<8x128xi32>
    %25 = arith.sitofp %24 : vector<8x128xi32> to vector<8x128xf32>
    %26 = arith.truncf %25 : vector<8x128xf32> to vector<8x128xbf16>
    %27 = arith.index_cast %c0_i32_12 : i32 to index
    %c0_19 = arith.constant 0 : index
    %c0_20 = arith.constant 0 : index
    %28 = vector.load %arg5[%27, %c0_19, %c0_20] : memref<8x8x128xbf16, #tpu.memory_space<vmem>>, vector<1x8x128xbf16>
    %29 = vector.shape_cast %28 : vector<1x8x128xbf16> to vector<8x128xbf16>
    %30 = vector.shape_cast %26 : vector<8x128xbf16> to vector<1x8x128xbf16>
    tpu.vector_store %arg5[%27, %c0_19, %c0_20], %30 {strides = array<i32>} : memref<8x8x128xbf16, #tpu.memory_space<vmem>>, vector<1x8x128xbf16>,
    %cst_21 = arith.constant 0.000000e+00 : f32
    %31 = vector.broadcast %cst_21 : f32 to vector<8x128xf32>
    %32 = arith.select %23, %31, %15 : vector<8x128xi1>, vector<8x128xf32>
    %c1_i32 = arith.constant 1 : i32
    %cst_22 = arith.constant 0.949999988 : f32
    %33 = vector.broadcast %cst_22 : f32 to vector<8x128xf32>
    %34 = arith.mulf %33, %32 : vector<8x128xf32>
    %cst_23 = arith.constant 5.000000e-02 : f32
    %35 = vector.broadcast %cst_23 : f32 to vector<8x128xf32>
    %36 = arith.mulf %35, %21 : vector<8x128xf32>
    %37 = arith.addf %34, %36 : vector<8x128xf32>
    %cst_24 = arith.constant 8.000000e-01 : f32
    %38 = vector.broadcast %cst_24 : f32 to vector<8x128xf32>
    %39 = arith.mulf %38, %21 : vector<8x128xf32>
    %40 = arith.index_cast %c1_i32 : i32 to index
    %c0_25 = arith.constant 0 : index
    %c0_26 = arith.constant 0 : index
    %41 = vector.load %arg8[%40, %c0_25, %c0_26] : memref<8x8x128xf32, #tpu.memory_space<vmem>>, vector<1x8x128xf32>
    %42 = vector.shape_cast %41 : vector<1x8x128xf32> to vector<8x128xf32>
    %43 = arith.addf %39, %42 : vector<8x128xf32>
    %cst_27 = arith.constant 1.000000e+00 : f32
    %44 = vector.broadcast %cst_27 : f32 to vector<8x128xf32>
    %45 = arith.cmpf ogt, %37, %44 : vector<8x128xf32>
    %46 = arith.extui %45 : vector<8x128xi1> to vector<8x128xi32>
    %47 = arith.sitofp %46 : vector<8x128xi32> to vector<8x128xf32>
    %48 = arith.truncf %47 : vector<8x128xf32> to vector<8x128xbf16>
    %49 = arith.index_cast %c1_i32 : i32 to index
    %c0_28 = arith.constant 0 : index
    %c0_29 = arith.constant 0 : index
    %50 = vector.load %arg5[%49, %c0_28, %c0_29] : memref<8x8x128xbf16, #tpu.memory_space<vmem>>, vector<1x8x128xbf16>
    %51 = vector.shape_cast %50 : vector<1x8x128xbf16> to vector<8x128xbf16>
    %52 = vector.shape_cast %48 : vector<8x128xbf16> to vector<1x8x128xbf16>
    tpu.vector_store %arg5[%49, %c0_28, %c0_29], %52 {strides = array<i32>} : memref<8x8x128xbf16, #tpu.memory_space<vmem>>, vector<1x8x128xbf16>,
    %cst_30 = arith.constant 0.000000e+00 : f32
    %53 = vector.broadcast %cst_30 : f32 to vector<8x128xf32>
    %54 = arith.select %45, %53, %37 : vector<8x128xi1>, vector<8x128xf32>
    %c2_i32 = arith.constant 2 : i32
    %cst_31 = arith.constant 0.949999988 : f32
    %55 = vector.broadcast %cst_31 : f32 to vector<8x128xf32>
    %56 = arith.mulf %55, %54 : vector<8x128xf32>
    %cst_32 = arith.constant 5.000000e-02 : f32
    %57 = vector.broadcast %cst_32 : f32 to vector<8x128xf32>
    %58 = arith.mulf %57, %43 : vector<8x128xf32>
    %59 = arith.addf %56, %58 : vector<8x128xf32>
    %cst_33 = arith.constant 8.000000e-01 : f32
    %60 = vector.broadcast %cst_33 : f32 to vector<8x128xf32>
    %61 = arith.mulf %60, %43 : vector<8x128xf32>
    %62 = arith.index_cast %c2_i32 : i32 to index
    %c0_34 = arith.constant 0 : index
    %c0_35 = arith.constant 0 : index
    %63 = vector.load %arg8[%62, %c0_34, %c0_35] : memref<8x8x128xf32, #tpu.memory_space<vmem>>, vector<1x8x128xf32>
    %64 = vector.shape_cast %63 : vector<1x8x128xf32> to vector<8x128xf32>
    %65 = arith.addf %61, %64 : vector<8x128xf32>
    %cst_36 = arith.constant 1.000000e+00 : f32
    %66 = vector.broadcast %cst_36 : f32 to vector<8x128xf32>
    %67 = arith.cmpf ogt, %59, %66 : vector<8x128xf32>
    %68 = arith.extui %67 : vector<8x128xi1> to vector<8x128xi32>
    %69 = arith.sitofp %68 : vector<8x128xi32> to vector<8x128xf32>
    %70 = arith.truncf %69 : vector<8x128xf32> to vector<8x128xbf16>
    %71 = arith.index_cast %c2_i32 : i32 to index
    %c0_37 = arith.constant 0 : index
    %c0_38 = arith.constant 0 : index
    %72 = vector.load %arg5[%71, %c0_37, %c0_38] : memref<8x8x128xbf16, #tpu.memory_space<vmem>>, vector<1x8x128xbf16>
    %73 = vector.shape_cast %72 : vector<1x8x128xbf16> to vector<8x128xbf16>
    %74 = vector.shape_cast %70 : vector<8x128xbf16> to vector<1x8x128xbf16>
    tpu.vector_store %arg5[%71, %c0_37, %c0_38], %74 {strides = array<i32>} : memref<8x8x128xbf16, #tpu.memory_space<vmem>>, vector<1x8x128xbf16>,
    %cst_39 = arith.constant 0.000000e+00 : f32
    %75 = vector.broadcast %cst_39 : f32 to vector<8x128xf32>
    %76 = arith.select %67, %75, %59 : vector<8x128xi1>, vector<8x128xf32>
    %c3_i32 = arith.constant 3 : i32
    %cst_40 = arith.constant 0.949999988 : f32
    %77 = vector.broadcast %cst_40 : f32 to vector<8x128xf32>
    %78 = arith.mulf %77, %76 : vector<8x128xf32>
    %cst_41 = arith.constant 5.000000e-02 : f32
    %79 = vector.broadcast %cst_41 : f32 to vector<8x128xf32>
    %80 = arith.mulf %79, %65 : vector<8x128xf32>
    %81 = arith.addf %78, %80 : vector<8x128xf32>
    %cst_42 = arith.constant 8.000000e-01 : f32
    %82 = vector.broadcast %cst_42 : f32 to vector<8x128xf32>
    %83 = arith.mulf %82, %65 : vector<8x128xf32>
    %84 = arith.index_cast %c3_i32 : i32 to index
    %c0_43 = arith.constant 0 : index
    %c0_44 = arith.constant 0 : index
    %85 = vector.load %arg8[%84, %c0_43, %c0_44] : memref<8x8x128xf32, #tpu.memory_space<vmem>>, vector<1x8x128xf32>
    %86 = vector.shape_cast %85 : vector<1x8x128xf32> to vector<8x128xf32>
    %87 = arith.addf %83, %86 : vector<8x128xf32>
    %cst_45 = arith.constant 1.000000e+00 : f32
    %88 = vector.broadcast %cst_45 : f32 to vector<8x128xf32>
    %89 = arith.cmpf ogt, %81, %88 : vector<8x128xf32>
    %90 = arith.extui %89 : vector<8x128xi1> to vector<8x128xi32>
    %91 = arith.sitofp %90 : vector<8x128xi32> to vector<8x128xf32>
    %92 = arith.truncf %91 : vector<8x128xf32> to vector<8x128xbf16>
    %93 = arith.index_cast %c3_i32 : i32 to index
    %c0_46 = arith.constant 0 : index
    %c0_47 = arith.constant 0 : index
    %94 = vector.load %arg5[%93, %c0_46, %c0_47] : memref<8x8x128xbf16, #tpu.memory_space<vmem>>, vector<1x8x128xbf16>
    %95 = vector.shape_cast %94 : vector<1x8x128xbf16> to vector<8x128xbf16>
    %96 = vector.shape_cast %92 : vector<8x128xbf16> to vector<1x8x128xbf16>
    tpu.vector_store %arg5[%93, %c0_46, %c0_47], %96 {strides = array<i32>} : memref<8x8x128xbf16, #tpu.memory_space<vmem>>, vector<1x8x128xbf16>,
    %cst_48 = arith.constant 0.000000e+00 : f32
    %97 = vector.broadcast %cst_48 : f32 to vector<8x128xf32>
    %98 = arith.select %89, %97, %81 : vector<8x128xi1>, vector<8x128xf32>
    %c4_i32 = arith.constant 4 : i32
    %cst_49 = arith.constant 0.949999988 : f32
    %99 = vector.broadcast %cst_49 : f32 to vector<8x128xf32>
    %100 = arith.mulf %99, %98 : vector<8x128xf32>
    %cst_50 = arith.constant 5.000000e-02 : f32
    %101 = vector.broadcast %cst_50 : f32 to vector<8x128xf32>
    %102 = arith.mulf %101, %87 : vector<8x128xf32>
    %103 = arith.addf %100, %102 : vector<8x128xf32>
    %cst_51 = arith.constant 8.000000e-01 : f32
    %104 = vector.broadcast %cst_51 : f32 to vector<8x128xf32>
    %105 = arith.mulf %104, %87 : vector<8x128xf32>
    %106 = arith.index_cast %c4_i32 : i32 to index
    %c0_52 = arith.constant 0 : index
    %c0_53 = arith.constant 0 : index
    %107 = vector.load %arg8[%106, %c0_52, %c0_53] : memref<8x8x128xf32, #tpu.memory_space<vmem>>, vector<1x8x128xf32>
    %108 = vector.shape_cast %107 : vector<1x8x128xf32> to vector<8x128xf32>
    %109 = arith.addf %105, %108 : vector<8x128xf32>
    %cst_54 = arith.constant 1.000000e+00 : f32
    %110 = vector.broadcast %cst_54 : f32 to vector<8x128xf32>
    %111 = arith.cmpf ogt, %103, %110 : vector<8x128xf32>
    %112 = arith.extui %111 : vector<8x128xi1> to vector<8x128xi32>
    %113 = arith.sitofp %112 : vector<8x128xi32> to vector<8x128xf32>
    %114 = arith.truncf %113 : vector<8x128xf32> to vector<8x128xbf16>
    %115 = arith.index_cast %c4_i32 : i32 to index
    %c0_55 = arith.constant 0 : index
    %c0_56 = arith.constant 0 : index
    %116 = vector.load %arg5[%115, %c0_55, %c0_56] : memref<8x8x128xbf16, #tpu.memory_space<vmem>>, vector<1x8x128xbf16>
    %117 = vector.shape_cast %116 : vector<1x8x128xbf16> to vector<8x128xbf16>
    %118 = vector.shape_cast %114 : vector<8x128xbf16> to vector<1x8x128xbf16>
    tpu.vector_store %arg5[%115, %c0_55, %c0_56], %118 {strides = array<i32>} : memref<8x8x128xbf16, #tpu.memory_space<vmem>>, vector<1x8x128xbf16>,
    %cst_57 = arith.constant 0.000000e+00 : f32
    %119 = vector.broadcast %cst_57 : f32 to vector<8x128xf32>
    %120 = arith.select %111, %119, %103 : vector<8x128xi1>, vector<8x128xf32>
    %c5_i32 = arith.constant 5 : i32
    %cst_58 = arith.constant 0.949999988 : f32
    %121 = vector.broadcast %cst_58 : f32 to vector<8x128xf32>
    %122 = arith.mulf %121, %120 : vector<8x128xf32>
    %cst_59 = arith.constant 5.000000e-02 : f32
    %123 = vector.broadcast %cst_59 : f32 to vector<8x128xf32>
    %124 = arith.mulf %123, %109 : vector<8x128xf32>
    %125 = arith.addf %122, %124 : vector<8x128xf32>
    %cst_60 = arith.constant 8.000000e-01 : f32
    %126 = vector.broadcast %cst_60 : f32 to vector<8x128xf32>
    %127 = arith.mulf %126, %109 : vector<8x128xf32>
    %128 = arith.index_cast %c5_i32 : i32 to index
    %c0_61 = arith.constant 0 : index
    %c0_62 = arith.constant 0 : index
    %129 = vector.load %arg8[%128, %c0_61, %c0_62] : memref<8x8x128xf32, #tpu.memory_space<vmem>>, vector<1x8x128xf32>
    %130 = vector.shape_cast %129 : vector<1x8x128xf32> to vector<8x128xf32>
    %131 = arith.addf %127, %130 : vector<8x128xf32>
    %cst_63 = arith.constant 1.000000e+00 : f32
    %132 = vector.broadcast %cst_63 : f32 to vector<8x128xf32>
    %133 = arith.cmpf ogt, %125, %132 : vector<8x128xf32>
    %134 = arith.extui %133 : vector<8x128xi1> to vector<8x128xi32>
    %135 = arith.sitofp %134 : vector<8x128xi32> to vector<8x128xf32>
    %136 = arith.truncf %135 : vector<8x128xf32> to vector<8x128xbf16>
    %137 = arith.index_cast %c5_i32 : i32 to index
    %c0_64 = arith.constant 0 : index
    %c0_65 = arith.constant 0 : index
    %138 = vector.load %arg5[%137, %c0_64, %c0_65] : memref<8x8x128xbf16, #tpu.memory_space<vmem>>, vector<1x8x128xbf16>
    %139 = vector.shape_cast %138 : vector<1x8x128xbf16> to vector<8x128xbf16>
    %140 = vector.shape_cast %136 : vector<8x128xbf16> to vector<1x8x128xbf16>
    tpu.vector_store %arg5[%137, %c0_64, %c0_65], %140 {strides = array<i32>} : memref<8x8x128xbf16, #tpu.memory_space<vmem>>, vector<1x8x128xbf16>,
    %cst_66 = arith.constant 0.000000e+00 : f32
    %141 = vector.broadcast %cst_66 : f32 to vector<8x128xf32>
    %142 = arith.select %133, %141, %125 : vector<8x128xi1>, vector<8x128xf32>
    %c6_i32 = arith.constant 6 : i32
    %cst_67 = arith.constant 0.949999988 : f32
    %143 = vector.broadcast %cst_67 : f32 to vector<8x128xf32>
    %144 = arith.mulf %143, %142 : vector<8x128xf32>
    %cst_68 = arith.constant 5.000000e-02 : f32
    %145 = vector.broadcast %cst_68 : f32 to vector<8x128xf32>
    %146 = arith.mulf %145, %131 : vector<8x128xf32>
    %147 = arith.addf %144, %146 : vector<8x128xf32>
    %cst_69 = arith.constant 8.000000e-01 : f32
    %148 = vector.broadcast %cst_69 : f32 to vector<8x128xf32>
    %149 = arith.mulf %148, %131 : vector<8x128xf32>
    %150 = arith.index_cast %c6_i32 : i32 to index
    %c0_70 = arith.constant 0 : index
    %c0_71 = arith.constant 0 : index
    %151 = vector.load %arg8[%150, %c0_70, %c0_71] : memref<8x8x128xf32, #tpu.memory_space<vmem>>, vector<1x8x128xf32>
    %152 = vector.shape_cast %151 : vector<1x8x128xf32> to vector<8x128xf32>
    %153 = arith.addf %149, %152 : vector<8x128xf32>
    %cst_72 = arith.constant 1.000000e+00 : f32
    %154 = vector.broadcast %cst_72 : f32 to vector<8x128xf32>
    %155 = arith.cmpf ogt, %147, %154 : vector<8x128xf32>
    %156 = arith.extui %155 : vector<8x128xi1> to vector<8x128xi32>
    %157 = arith.sitofp %156 : vector<8x128xi32> to vector<8x128xf32>
    %158 = arith.truncf %157 : vector<8x128xf32> to vector<8x128xbf16>
    %159 = arith.index_cast %c6_i32 : i32 to index
    %c0_73 = arith.constant 0 : index
    %c0_74 = arith.constant 0 : index
    %160 = vector.load %arg5[%159, %c0_73, %c0_74] : memref<8x8x128xbf16, #tpu.memory_space<vmem>>, vector<1x8x128xbf16>
    %161 = vector.shape_cast %160 : vector<1x8x128xbf16> to vector<8x128xbf16>
    %162 = vector.shape_cast %158 : vector<8x128xbf16> to vector<1x8x128xbf16>
    tpu.vector_store %arg5[%159, %c0_73, %c0_74], %162 {strides = array<i32>} : memref<8x8x128xbf16, #tpu.memory_space<vmem>>, vector<1x8x128xbf16>,
    %cst_75 = arith.constant 0.000000e+00 : f32
    %163 = vector.broadcast %cst_75 : f32 to vector<8x128xf32>
    %164 = arith.select %155, %163, %147 : vector<8x128xi1>, vector<8x128xf32>
    %c7_i32 = arith.constant 7 : i32
    %cst_76 = arith.constant 0.949999988 : f32
    %165 = vector.broadcast %cst_76 : f32 to vector<8x128xf32>
    %166 = arith.mulf %165, %164 : vector<8x128xf32>
    %cst_77 = arith.constant 5.000000e-02 : f32
    %167 = vector.broadcast %cst_77 : f32 to vector<8x128xf32>
    %168 = arith.mulf %167, %153 : vector<8x128xf32>
    %169 = arith.addf %166, %168 : vector<8x128xf32>
    %cst_78 = arith.constant 8.000000e-01 : f32
    %170 = vector.broadcast %cst_78 : f32 to vector<8x128xf32>
    %171 = arith.mulf %170, %153 : vector<8x128xf32>
    %172 = arith.index_cast %c7_i32 : i32 to index
    %c0_79 = arith.constant 0 : index
    %c0_80 = arith.constant 0 : index
    %173 = vector.load %arg8[%172, %c0_79, %c0_80] : memref<8x8x128xf32, #tpu.memory_space<vmem>>, vector<1x8x128xf32>
    %174 = vector.shape_cast %173 : vector<1x8x128xf32> to vector<8x128xf32>
    %175 = arith.addf %171, %174 : vector<8x128xf32>
    %cst_81 = arith.constant 1.000000e+00 : f32
    %176 = vector.broadcast %cst_81 : f32 to vector<8x128xf32>
    %177 = arith.cmpf ogt, %169, %176 : vector<8x128xf32>
    %178 = arith.extui %177 : vector<8x128xi1> to vector<8x128xi32>
    %179 = arith.sitofp %178 : vector<8x128xi32> to vector<8x128xf32>
    %180 = arith.truncf %179 : vector<8x128xf32> to vector<8x128xbf16>
    %181 = arith.index_cast %c7_i32 : i32 to index
    %c0_82 = arith.constant 0 : index
    %c0_83 = arith.constant 0 : index
    %182 = vector.load %arg5[%181, %c0_82, %c0_83] : memref<8x8x128xbf16, #tpu.memory_space<vmem>>, vector<1x8x128xbf16>
    %183 = vector.shape_cast %182 : vector<1x8x128xbf16> to vector<8x128xbf16>
    %184 = vector.shape_cast %180 : vector<8x128xbf16> to vector<1x8x128xbf16>
    tpu.vector_store %arg5[%181, %c0_82, %c0_83], %184 {strides = array<i32>} : memref<8x8x128xbf16, #tpu.memory_space<vmem>>, vector<1x8x128xbf16>,
    %cst_84 = arith.constant 0.000000e+00 : f32
    %185 = vector.broadcast %cst_84 : f32 to vector<8x128xf32>
    %186 = arith.select %177, %185, %169 : vector<8x128xi1>, vector<8x128xf32>
    %c8_i32 = arith.constant 8 : i32
    %c0_85 = arith.constant 0 : index
    %c0_86 = arith.constant 0 : index
    %187 = vector.load %arg6[%c0_85, %c0_86] : memref<8x128xf32, #tpu.memory_space<vmem>>, vector<8x128xf32>
    tpu.vector_store %arg6[%c0_85, %c0_86], %186 {strides = array<i32>} : memref<8x128xf32, #tpu.memory_space<vmem>>, vector<8x128xf32>,
    %c0_87 = arith.constant 0 : index
    %c0_88 = arith.constant 0 : index
    %188 = vector.load %arg7[%c0_87, %c0_88] : memref<8x128xf32, #tpu.memory_space<vmem>>, vector<8x128xf32>
    tpu.vector_store %arg7[%c0_87, %c0_88], %175 {strides = array<i32>} : memref<8x128xf32, #tpu.memory_space<vmem>>, vector<8x128xf32>,
    return
  }
  func.func @transform_0(%arg0: i32, %arg1: i32, %arg2: i32) -> (i32, i32, i32) {
    %c0_i32 = arith.constant 0 : i32
    %c0_i32_0 = arith.constant 0 : i32
    return %arg2, %arg0, %c0_i32 : i32, i32, i32
  }
  func.func @transform_1(%arg0: i32, %arg1: i32, %arg2: i32) -> (i32, i32) {
    %c0_i32 = arith.constant 0 : i32
    %c0_i32_0 = arith.constant 0 : i32
    return %c0_i32, %arg1 : i32, i32
  }
  func.func @transform_2(%arg0: i32, %arg1: i32, %arg2: i32) -> (i32, i32, i32) {
    %c0_i32 = arith.constant 0 : i32
    return %arg2, %arg0, %arg1 : i32, i32, i32
  }
}

</mosaic_0001>

<bundles_post_ra>
// kernel: spiking_linear_forward.1
= control target key start
LH: loop header
LB: loop body
LE: loop exit
PB: predicated region body
PF: predicated region fallthrough
CT: control target
= control target key end

     0   :  { %v398_v12 = vmov 0.0|0.0   ;;  %v399_v24 = vmov 0.0   ;;  %s475_s1 = inlined_call_operand.vmem [shape: bf16[128,128], index: 1, kind: input, shape index: {}]   ;;  %s476_s0 = inlined_call_operand.vmem [shape: bf16[8,8,128], index: 0, kind: input, shape index: {}]   ;;  %s477_s2 = inlined_call_operand.vmem [shape: bf16[8,8,128], index: 2, kind: output, shape index: {}]  }
   0x1   :  { %v386_v0 = vld [vmem:[%s475_s1] sm:$0xff]   ;;  %v387_v1 = vld [vmem:[%s475_s1 + $0x8] sm:$0xff]   ;;  %v388_v2 = vld [vmem:[%s475_s1 + $0x10] sm:$0xff]   ;;  %199 = vst [vmem:[%s477_s2] sm:$0xf] %v398_v12 }
   0x2   :  { %344 = vmatprep.subr.bf16.mxu0 %v386_v0  ;;  %368 = vmatprep.subr.bf16.mxu1 %v386_v0  ;;  %v389_v3 = vld [vmem:[%s475_s1 + $0x18] sm:$0xff]   ;;  %v394_v4 = vld [vmem:[%s476_s0] sm:$0xff]   ;;  %v396_v5 = vld [vmem:[%s476_s0 + $0x10] sm:$0xff]  }
   0x3   :  { %345 = vmatpush3.bf16.msra.mxu0 %v386_v0  ;;  %376 = vmatpush3.bf16.msra.mxu1 %v386_v0  ;;  %v390_v6 = vld [vmem:[%s475_s1 + $0x20] sm:$0xff]   ;;  %v391_v7 = vld [vmem:[%s475_s1 + $0x28] sm:$0xff]   ;;  %v392_v8 = vld [vmem:[%s475_s1 + $0x30] sm:$0xff]  }
   0x4   :  { %346 = vmatprep.subr.bf16.mxu0 %v387_v1  ;;  %369 = vmatprep.subr.bf16.mxu1 %v387_v1  ;;  %v393_v9 = vld [vmem:[%s475_s1 + $0x38] sm:$0xff]   ;;  %v395_v10 = vld [vmem:[%s476_s0 + $0x8] sm:$0xff]  }
   0x5   :  { %360 = vmatprep.mubr.bf16.mxu0 %v394_v4  ;;  %364 = vmatprep.mubr.bf16.mxu1 %v396_v5  ;;  %v397_v11 = vld [vmem:[%s476_s0 + $0x18] sm:$0xff]  }
   0x7   :  { %347 = vmatpush3.bf16.msra.mxu0 %v387_v1  ;;  %377 = vmatpush3.bf16.msra.mxu1 %v387_v1 }
   0x8   :  { %348 = vmatprep.subr.bf16.mxu0 %v388_v2  ;;  %370 = vmatprep.subr.bf16.mxu1 %v388_v2 }
   0xb   :  { %349 = vmatpush3.bf16.msra.mxu0 %v388_v2  ;;  %378 = vmatpush3.bf16.msra.mxu1 %v388_v2 }
   0xc   :  { %350 = vmatprep.subr.bf16.mxu0 %v389_v3  ;;  %371 = vmatprep.subr.bf16.mxu1 %v389_v3 }
   0xf   :  { %351 = vmatpush3.bf16.msra.mxu0 %v389_v3  ;;  %379 = vmatpush3.bf16.msra.mxu1 %v389_v3 }
  0x10   :  { %352 = vmatprep.subr.bf16.mxu0 %v390_v6  ;;  %372 = vmatprep.subr.bf16.mxu1 %v390_v6 }
  0x13   :  { %353 = vmatpush3.bf16.msra.mxu0 %v390_v6  ;;  %380 = vmatpush3.bf16.msra.mxu1 %v390_v6 }
  0x14   :  { %354 = vmatprep.subr.bf16.mxu0 %v391_v7  ;;  %373 = vmatprep.subr.bf16.mxu1 %v391_v7 }
  0x17   :  { %355 = vmatpush3.bf16.msra.mxu0 %v391_v7  ;;  %381 = vmatpush3.bf16.msra.mxu1 %v391_v7 }
  0x18   :  { %356 = vmatprep.subr.bf16.mxu0 %v392_v8  ;;  %374 = vmatprep.subr.bf16.mxu1 %v392_v8 }
  0x1b   :  { %357 = vmatpush3.bf16.msra.mxu0 %v392_v8  ;;  %382 = vmatpush3.bf16.msra.mxu1 %v392_v8 }
  0x1c   :  { %358 = vmatprep.subr.bf16.mxu0 %v393_v9  ;;  %375 = vmatprep.subr.bf16.mxu1 %v393_v9 }
  0x1f   :  { %359 = vmatpush3.bf16.msra.mxu0 %v393_v9  ;;  %383 = vmatpush3.bf16.msra.mxu1 %v393_v9 }
  0x22   :  { %361 = vmatmul.mubr.bf16.vlgmr.msra.gmra.mrb[0].mxu0 %v395_v10  ;;  %365 = vmatmul.mubr.bf16.vlgmr.msra.gmra.mrb[0].mxu1 %v397_v11 }
  0xf5   :  { %v362_v13 = vpop.f32.mrb[0].mxu0  ;;  %v366_v14 = vpop.f32.mrb[0].mxu1 }
  0xf6   :  { %v148_v15 = vpop.f32.mrb[1].mxu0  ;;  %v164_v16 = vpop.f32.mrb[1].mxu1 }
  0xf7   :  { %v202_v17 = vmul.f32 0.05, %v148_v15  ;;  %v204_v18 = vmul.f32 0.8, %v148_v15  ;;  %v363_v19 = vpop.f32.mrb[2].mxu0  ;;  %v367_v20 = vpop.f32.mrb[2].mxu1 }
  0xf8   :  { %v151_v21 = vpop.f32.mrb[3].mxu0  ;;  %v167_v22 = vpop.f32.mrb[3].mxu1 }
  0xf9   :  { %vm208_vm0 = vcmp.gt.f32.partialorder %v202_v17, 1.0  ;;  %v207_v23 = vadd.f32 %v204_v18, %v151_v21 }
  0xfa   :  { %v318_v25 = vsel %vm208_vm0, 1.0, %v399_v24  ;;  %v214_v26 = vsel %vm208_vm0, 0.0, %v202_v17 }
  0xfb   :  { %v211_v27 = vpack.c.bf16 %v318_v25, %v318_v25  ;;  %v215_v28 = vmul.f32 0.95, %v214_v26  ;;  %v216_v29 = vmul.f32 0.05, %v207_v23  ;;  %v218_v30 = vmul.f32 0.8, %v207_v23 }
  0xfd   :  { %319 = vst [vmem:[%s477_s2 + $0x4] sm:$0xf] %v211_v27  ;;  %v217_v31 = vadd.f32 %v216_v29, %v215_v28  ;;  %v221_v32 = vadd.f32 %v362_v13, %v218_v30 }
  0xff   :  { %vm222_vm1 = vcmp.gt.f32.partialorder %v217_v31, 1.0  ;;  %v232_v33 = vmul.f32 0.8, %v221_v32  ;;  %v230_v38 = vmul.f32 0.05, %v221_v32 }
 0x100   :  { %v320_v34 = vsel %vm222_vm1, 1.0, %v399_v24  ;;  %v228_v35 = vsel %vm222_vm1, 0.0, %v217_v31 }
 0x101   :  { %v225_v36 = vpack.c.bf16 %v320_v34, %v320_v34  ;;  %v229_v37 = vmul.f32 0.95, %v228_v35  ;;  %v235_v39 = vadd.f32 %v363_v19, %v232_v33 }
 0x103   :  { %321 = vst [vmem:[%s477_s2 + $0x8] sm:$0xf] %v225_v36  ;;  %v231_v40 = vadd.f32 %v230_v38, %v229_v37  ;;  %v246_v41 = vmul.f32 0.8, %v235_v39  ;;  %v244_v47 = vmul.f32 0.05, %v235_v39 }
 0x105   :  { %vm236_vm2 = vcmp.gt.f32.partialorder %v231_v40, 1.0  ;;  %v249_v42 = vadd.f32 %v246_v41, %v164_v16 }
 0x106   :  { %v322_v43 = vsel %vm236_vm2, 1.0, %v399_v24  ;;  %v242_v44 = vsel %vm236_vm2, 0.0, %v231_v40 }
 0x107   :  { %v239_v45 = vpack.c.bf16 %v322_v43, %v322_v43  ;;  %v243_v46 = vmul.f32 0.95, %v242_v44  ;;  %v260_v48 = vmul.f32 0.8, %v249_v42  ;;  %v258_v56 = vmul.f32 0.05, %v249_v42 }
 0x109   :  { %323 = vst [vmem:[%s477_s2 + $0xc] sm:$0xf] %v239_v45  ;;  %v245_v49 = vadd.f32 %v244_v47, %v243_v46  ;;  %v263_v50 = vadd.f32 %v260_v48, %v167_v22 }
 0x10b   :  { %vm250_vm3 = vcmp.gt.f32.partialorder %v245_v49, 1.0  ;;  %v274_v51 = vmul.f32 0.8, %v263_v50  ;;  %v272_v63 = vmul.f32 0.05, %v263_v50 }
 0x10c   :  { %v324_v52 = vsel %vm250_vm3, 1.0, %v399_v24  ;;  %v256_v53 = vsel %vm250_vm3, 0.0, %v245_v49 }
 0x10d   :  { %v253_v54 = vpack.c.bf16 %v324_v52, %v324_v52  ;;  %v257_v55 = vmul.f32 0.95, %v256_v53  ;;  %v277_v57 = vadd.f32 %v366_v14, %v274_v51 }
 0x10f   :  { %325 = vst [vmem:[%s477_s2 + $0x10] sm:$0xf] %v253_v54  ;;  %v259_v58 = vadd.f32 %v258_v56, %v257_v55  ;;  %v286_v5 = vmul.f32 0.05, %v277_v57 }
 0x111   :  { %vm264_vm4 = vcmp.gt.f32.partialorder %v259_v58, 1.0 }
 0x112   :  { %v326_v59 = vsel %vm264_vm4, 1.0, %v399_v24  ;;  %v270_v60 = vsel %vm264_vm4, 0.0, %v259_v58 }
 0x113   :  { %v267_v61 = vpack.c.bf16 %v326_v59, %v326_v59  ;;  %v271_v62 = vmul.f32 0.95, %v270_v60 }
 0x115   :  { %327 = vst [vmem:[%s477_s2 + $0x14] sm:$0xf] %v267_v61  ;;  %v273_v0 = vadd.f32 %v272_v63, %v271_v62 }
 0x117   :  { %vm278_vm5 = vcmp.gt.f32.partialorder %v273_v0, 1.0 }
 0x118   :  { %v328_v1 = vsel %vm278_vm5, 1.0, %v399_v24  ;;  %v284_v2 = vsel %vm278_vm5, 0.0, %v273_v0 }
 0x119   :  { %v281_v3 = vpack.c.bf16 %v328_v1, %v328_v1  ;;  %v285_v4 = vmul.f32 0.95, %v284_v2 }
 0x11b   :  { %329 = vst [vmem:[%s477_s2 + $0x18] sm:$0xf] %v281_v3  ;;  %v287_v6 = vadd.f32 %v286_v5, %v285_v4 }
 0x11d   :  { %vm292_vm6 = vcmp.gt.f32.partialorder %v287_v6, 1.0 }
 0x11e   :  { %v330_v7 = vsel %vm292_vm6, 1.0, %v399_v24 }
 0x11f   :  { %v295_v8 = vpack.c.bf16 %v330_v7, %v330_v7 }
 0x121   :  { %331 = vst [vmem:[%s477_s2 + $0x1c] sm:$0xf] %v295_v8 }

</bundles_post_ra>
